<compile_context>
chip_gen: v7x
topology: tpu7x:2x2x1
jax: 0.10.0
libtpu: 0.0.40
codegen_flags: <defaults>
</compile_context>

<pallas_src>
import functools

import jax
import jax.numpy as jnp
from jax import lax
from jax.experimental import pallas as pl
from jax.experimental.pallas import tpu as pltpu


def _round_up(x, m):
    return ((x + m - 1) // m) * m


def _te_emb_kernel(te_ref, w1_ref, b1_ref, w2_ref, b2_ref, out_ref):
    # te_ref: [TILE_N, 2] int32 (col 0 = dayofweek, col 1 = timeofday)
    te = te_ref[...]
    tile_n = te.shape[0]
    k_pad = w1_ref.shape[0]                  # padded one-hot width (64)

    day = jnp.mod(te[:, 0:1], 5)             # values in [0, 5)
    tod = jnp.mod(te[:, 1:2], 50) + 5        # values in [5, 55)

    # Single fused one-hot: lanes 0..4 encode day, lanes 5..54 encode tod,
    # lanes 55..k_pad-1 stay zero (matching the zero-padded rows of W1).
    lanes = lax.broadcasted_iota(jnp.int32, (tile_n, k_pad), 1)
    oh = jnp.logical_or(lanes == day, lanes == tod).astype(jnp.float32)

    # FeedForward([55, D, D]): relu(x @ W1 + b1) @ W2 + b2.
    # Padded columns are relu(0 + 0) = 0 and hit zero rows of W2, so the
    # padded output columns are exactly zero.
    h = jnp.maximum(
        jnp.dot(oh, w1_ref[...], preferred_element_type=jnp.float32)
        + b1_ref[...],
        0.0)
    out_ref[...] = (
        jnp.dot(h, w2_ref[...], preferred_element_type=jnp.float32)
        + b2_ref[...])


@functools.partial(jax.jit, static_argnames=("D", "tile_n"))
def temporal_embedding(TE, params, *, D, tile_n=1024):
    """TE: [B, T, 2] integer array -> [B, T, 1, D] float32."""
    B, T, _ = TE.shape
    N = B * T
    K_PAD = 64                                # one-hot K padded 55 -> 64
    D_pad = _round_up(max(D, 128), 128)       # lane-dense output width

    w1, b1, w2, b2 = params["w1"], params["b1"], params["w2"], params["b2"]
    # Zero-pad parameters to lane/sublane-aligned shapes (done once in XLA).
    w1_pad = jnp.zeros((K_PAD, D_pad), jnp.float32).at[:55, :D].set(w1)
    b1_pad = jnp.zeros((1, D_pad), jnp.float32).at[0, :D].set(b1)
    w2_pad = jnp.zeros((D_pad, D_pad), jnp.float32).at[:D, :D].set(w2)
    b2_pad = jnp.zeros((1, D_pad), jnp.float32).at[0, :D].set(b2)

    # One [N, 2] int32 input instead of two [N, 1] inputs.
    te_flat = TE.reshape(N, 2).astype(jnp.int32)
    tile = min(tile_n, _round_up(N, 8))       # sublane-aligned row tile
    n_pad = _round_up(N, tile)
    if n_pad != N:
        te_flat = jnp.pad(te_flat, ((0, n_pad - N), (0, 0)))

    out = pl.pallas_call(
        _te_emb_kernel,
        out_shape=jax.ShapeDtypeStruct((n_pad, D_pad), jnp.float32),
        grid=(n_pad // tile,),
        in_specs=[
            pl.BlockSpec((tile, 2), lambda i: (i, 0)),        # TE rows (tiled)
            pl.BlockSpec((K_PAD, D_pad), lambda i: (0, 0)),   # W1 (resident)
            pl.BlockSpec((1, D_pad), lambda i: (0, 0)),       # b1 (resident)
            pl.BlockSpec((D_pad, D_pad), lambda i: (0, 0)),   # W2 (resident)
            pl.BlockSpec((1, D_pad), lambda i: (0, 0)),       # b2 (resident)
        ],
        out_specs=pl.BlockSpec((tile, D_pad), lambda i: (i, 0)),
        compiler_params=pltpu.CompilerParams(
            dimension_semantics=("parallel",)),
    )(te_flat, w1_pad, b1_pad, w2_pad, b2_pad)

    return out[:N, :D].reshape(B, T, 1, D)


def init_params(key, D):
    """Deterministic params mimicking nn.Linear(55, D) and nn.Linear(D, D)."""
    k1, k2, k3, k4 = jax.random.split(key, 4)
    bound1 = 1.0 / jnp.sqrt(55.0)
    bound2 = 1.0 / jnp.sqrt(float(D))
    return {
        # stored as [in, out] so the kernel does x @ W
        "w1": jax.random.uniform(k1, (55, D), jnp.float32, -bound1, bound1),
        "b1": jax.random.uniform(k2, (D,), jnp.float32, -bound1, bound1),
        "w2": jax.random.uniform(k3, (D, D), jnp.float32, -bound2, bound2),
        "b2": jax.random.uniform(k4, (D,), jnp.float32, -bound2, bound2),
    }


def reference_jax(TE, params):
    """Pure-JAX reference of the PyTorch forward (for self-check)."""
    day = jax.nn.one_hot(jnp.mod(TE[..., 0].astype(jnp.int32), 5), 5,
                         dtype=jnp.float32)
    tod = jax.nn.one_hot(jnp.mod(TE[..., 1].astype(jnp.int32), 50), 50,
                         dtype=jnp.float32)
    x = jnp.concatenate([day, tod], axis=-1)[:, :, None, :]  # [B,T,1,55]
    h = jax.nn.relu(x @ params["w1"] + params["b1"])
    return h @ params["w2"] + params["b2"]


if __name__ == "__main__":
    key = jax.random.PRNGKey(0)
    B, T_seq, D = 2, 8, 32

    k_te, k_par, k_te2 = jax.random.split(key, 3)
    # Integer time encodings as the module expects (dayofweek, timeofday).
    TE = jax.random.randint(k_te, (B, T_seq, 2), 0, 50, dtype=jnp.int32)
    params = init_params(k_par, D)

    out = jax.block_until_ready(temporal_embedding(TE, params, D=D))
    ref = reference_jax(TE, params)
    assert out.shape == (B, T_seq, 1, D), out.shape
    assert jnp.allclose(out, ref, atol=1e-5, rtol=1e-5), "mismatch vs reference"

    # Larger run: exercises the multi-tile grid + row padding path.
    B2, T2 = 4, 300
    TE2 = jax.random.randint(k_te2, (B2, T2, 2), 0, 50, dtype=jnp.int32)
    out2 = jax.block_until_ready(temporal_embedding(TE2, params, D=D))
    ref2 = reference_jax(TE2, params)
    assert out2.shape == (B2, T2, 1, D), out2.shape
    assert jnp.allclose(out2, ref2, atol=1e-5, rtol=1e-5), "mismatch (large)"

    print("KERNEL_OK")
</pallas_src>

<mosaic_0001>
module attributes {stable_mosaic.version = 11 : i64} {
  func.func @_te_emb_kernel(%arg0: i32, %arg1: memref<16x2xi32, #tpu.memory_space<vmem>>, %arg2: memref<64x128xf32, #tpu.memory_space<vmem>>, %arg3: memref<1x128xf32, #tpu.memory_space<vmem>>, %arg4: memref<128x128xf32, #tpu.memory_space<vmem>>, %arg5: memref<1x128xf32, #tpu.memory_space<vmem>>, %arg6: memref<16x128xf32, #tpu.memory_space<vmem>>) attributes {dimension_semantics = [#tpu.dimension_semantics<parallel>], iteration_bounds = array<i64: 1>, scalar_prefetch = 0 : i64, scratch_operands = 0 : i64, tpu.core_type = #tpu.core_type<tc>, window_params = [{transform_indices = @transform_0, window_bounds = array<i64: 16, 2>}, {pipeline_mode = #tpu.pipeline_mode<synchronous>, transform_indices = @transform_1, window_bounds = array<i64: 64, 128>}, {pipeline_mode = #tpu.pipeline_mode<synchronous>, transform_indices = @transform_2, window_bounds = array<i64: 1, 128>}, {pipeline_mode = #tpu.pipeline_mode<synchronous>, transform_indices = @transform_3, window_bounds = array<i64: 128, 128>}, {pipeline_mode = #tpu.pipeline_mode<synchronous>, transform_indices = @transform_4, window_bounds = array<i64: 1, 128>}, {transform_indices = @transform_5, window_bounds = array<i64: 16, 128>}]} {
    %c0 = arith.constant 0 : index
    %c0_0 = arith.constant 0 : index
    %0 = vector.load %arg1[%c0, %c0_0] : memref<16x2xi32, #tpu.memory_space<vmem>>, vector<16x2xi32>
    %1 = vector.extract_strided_slice %0 {offsets = [0, 0], sizes = [16, 1], strides = [1, 1]} : vector<16x2xi32> to vector<16x1xi32>
    %c5_i32 = arith.constant 5 : i32
    %c0_i32 = arith.constant 0 : i32
    %2 = arith.cmpi eq, %c5_i32, %c0_i32 : i32
    %c1_i32 = arith.constant 1 : i32
    %3 = arith.select %2, %c1_i32, %c5_i32 : i32
    %4 = vector.broadcast %3 : i32 to vector<16x1xi32>
    %5 = arith.remsi %1, %4 : vector<16x1xi32>
    %c0_i32_1 = arith.constant 0 : i32
    %6 = vector.broadcast %c0_i32_1 : i32 to vector<16x1xi32>
    %7 = arith.cmpi ne, %5, %6 : vector<16x1xi32>
    %c0_i32_2 = arith.constant 0 : i32
    %8 = vector.broadcast %c0_i32_2 : i32 to vector<16x1xi32>
    %9 = arith.cmpi slt, %5, %8 : vector<16x1xi32>
    %c0_i32_3 = arith.constant 0 : i32
    %10 = arith.cmpi slt, %3, %c0_i32_3 : i32
    %11 = vector.broadcast %10 : i1 to vector<16x1xi1>
    %12 = vector.broadcast %11 : vector<16x1xi1> to vector<16x1xi1>
    %13 = arith.xori %9, %12 : vector<16x1xi1>
    %14 = arith.andi %13, %7 : vector<16x1xi1>
    %15 = vector.broadcast %3 : i32 to vector<16x1xi32>
    %16 = arith.addi %5, %15 : vector<16x1xi32>
    %17 = arith.select %14, %16, %5 : vector<16x1xi1>, vector<16x1xi32>
    %18 = vector.extract_strided_slice %0 {offsets = [0, 1], sizes = [16, 1], strides = [1, 1]} : vector<16x2xi32> to vector<16x1xi32>
    %c50_i32 = arith.constant 50 : i32
    %c0_i32_4 = arith.constant 0 : i32
    %19 = arith.cmpi eq, %c50_i32, %c0_i32_4 : i32
    %c1_i32_5 = arith.constant 1 : i32
    %20 = arith.select %19, %c1_i32_5, %c50_i32 : i32
    %21 = vector.broadcast %20 : i32 to vector<16x1xi32>
    %22 = arith.remsi %18, %21 : vector<16x1xi32>
    %c0_i32_6 = arith.constant 0 : i32
    %23 = vector.broadcast %c0_i32_6 : i32 to vector<16x1xi32>
    %24 = arith.cmpi ne, %22, %23 : vector<16x1xi32>
    %c0_i32_7 = arith.constant 0 : i32
    %25 = vector.broadcast %c0_i32_7 : i32 to vector<16x1xi32>
    %26 = arith.cmpi slt, %22, %25 : vector<16x1xi32>
    %c0_i32_8 = arith.constant 0 : i32
    %27 = arith.cmpi slt, %20, %c0_i32_8 : i32
    %28 = vector.broadcast %27 : i1 to vector<16x1xi1>
    %29 = vector.broadcast %28 : vector<16x1xi1> to vector<16x1xi1>
    %30 = arith.xori %26, %29 : vector<16x1xi1>
    %31 = arith.andi %30, %24 : vector<16x1xi1>
    %32 = vector.broadcast %20 : i32 to vector<16x1xi32>
    %33 = arith.addi %22, %32 : vector<16x1xi32>
    %34 = arith.select %31, %33, %22 : vector<16x1xi1>, vector<16x1xi32>
    %c5_i32_9 = arith.constant 5 : i32
    %35 = vector.broadcast %c5_i32_9 : i32 to vector<16x1xi32>
    %36 = arith.addi %34, %35 : vector<16x1xi32>
    %37 = tpu.iota {dimensions = array<i32: 1>} : vector<16x64xi32>
    %38 = vector.broadcast %17 : vector<16x1xi32> to vector<16x64xi32>
    %39 = arith.cmpi eq, %37, %38 : vector<16x64xi32>
    %40 = vector.broadcast %36 : vector<16x1xi32> to vector<16x64xi32>
    %41 = arith.cmpi eq, %37, %40 : vector<16x64xi32>
    %42 = arith.ori %39, %41 : vector<16x64xi1>
    %43 = arith.extui %42 : vector<16x64xi1> to vector<16x64xi32>
    %44 = arith.sitofp %43 : vector<16x64xi32> to vector<16x64xf32>
    %c0_10 = arith.constant 0 : index
    %c0_11 = arith.constant 0 : index
    %45 = vector.load %arg2[%c0_10, %c0_11] : memref<64x128xf32, #tpu.memory_space<vmem>>, vector<64x128xf32>
    %cst = arith.constant dense<0.000000e+00> : vector<16x128xf32>
    %46 = tpu.matmul %44, %45, %cst {dimension_numbers = #tpu.dot_dimension_numbers<[1], [0], [0], [1], [0, 0, 1, 1], [], []>} : vector<16x64xf32>, vector<64x128xf32>, vector<16x128xf32> -> vector<16x128xf32>
    %c0_12 = arith.constant 0 : index
    %c0_13 = arith.constant 0 : index
    %47 = vector.load %arg3[%c0_12, %c0_13] : memref<1x128xf32, #tpu.memory_space<vmem>>, vector<1x128xf32>
    %48 = vector.broadcast %47 : vector<1x128xf32> to vector<16x128xf32>
    %49 = arith.addf %46, %48 : vector<16x128xf32>
    %cst_14 = arith.constant 0.000000e+00 : f32
    %50 = vector.broadcast %cst_14 : f32 to vector<16x128xf32>
    %51 = arith.maximumf %49, %50 : vector<16x128xf32>
    %c0_15 = arith.constant 0 : index
    %c0_16 = arith.constant 0 : index
    %52 = vector.load %arg4[%c0_15, %c0_16] : memref<128x128xf32, #tpu.memory_space<vmem>>, vector<128x128xf32>
    %cst_17 = arith.constant dense<0.000000e+00> : vector<16x128xf32>
    %53 = tpu.matmul %51, %52, %cst_17 {dimension_numbers = #tpu.dot_dimension_numbers<[1], [0], [0], [1], [0, 0, 1, 1], [], []>} : vector<16x128xf32>, vector<128x128xf32>, vector<16x128xf32> -> vector<16x128xf32>
    %c0_18 = arith.constant 0 : index
    %c0_19 = arith.constant 0 : index
    %54 = vector.load %arg5[%c0_18, %c0_19] : memref<1x128xf32, #tpu.memory_space<vmem>>, vector<1x128xf32>
    %55 = vector.broadcast %54 : vector<1x128xf32> to vector<16x128xf32>
    %56 = arith.addf %53, %55 : vector<16x128xf32>
    %c0_20 = arith.constant 0 : index
    %c0_21 = arith.constant 0 : index
    %57 = vector.load %arg6[%c0_20, %c0_21] : memref<16x128xf32, #tpu.memory_space<vmem>>, vector<16x128xf32>
    tpu.vector_store %arg6[%c0_20, %c0_21], %56 {strides = array<i32>} : memref<16x128xf32, #tpu.memory_space<vmem>>, vector<16x128xf32>,
    return
  }
  func.func @transform_0(%arg0: i32) -> (i32, i32) {
    %c0_i32 = arith.constant 0 : i32
    %c0_i32_0 = arith.constant 0 : i32
    return %arg0, %c0_i32 : i32, i32
  }
  func.func @transform_1(%arg0: i32) -> (i32, i32) {
    %c0_i32 = arith.constant 0 : i32
    %c0_i32_0 = arith.constant 0 : i32
    %c0_i32_1 = arith.constant 0 : i32
    return %c0_i32, %c0_i32_0 : i32, i32
  }
  func.func @transform_2(%arg0: i32) -> (i32, i32) {
    %c0_i32 = arith.constant 0 : i32
    %c0_i32_0 = arith.constant 0 : i32
    %c0_i32_1 = arith.constant 0 : i32
    return %c0_i32, %c0_i32_0 : i32, i32
  }
  func.func @transform_3(%arg0: i32) -> (i32, i32) {
    %c0_i32 = arith.constant 0 : i32
    %c0_i32_0 = arith.constant 0 : i32
    %c0_i32_1 = arith.constant 0 : i32
    return %c0_i32, %c0_i32_0 : i32, i32
  }
  func.func @transform_4(%arg0: i32) -> (i32, i32) {
    %c0_i32 = arith.constant 0 : i32
    %c0_i32_0 = arith.constant 0 : i32
    %c0_i32_1 = arith.constant 0 : i32
    return %c0_i32, %c0_i32_0 : i32, i32
  }
  func.func @transform_5(%arg0: i32) -> (i32, i32) {
    %c0_i32 = arith.constant 0 : i32
    %c0_i32_0 = arith.constant 0 : i32
    return %arg0, %c0_i32 : i32, i32
  }
}

</mosaic_0001>

<bundles_post_ra>
// kernel: temporal_embedding.1
= control target key start
LH: loop header
LB: loop body
LE: loop exit
PB: predicated region body
PF: predicated region fallthrough
CT: control target
= control target key end

     0   :  { %v510_v3 = vmov 0   ;;  %s662_s0 = inlined_call_operand.vmem [shape: s32[16,2], index: 0, kind: input, shape index: {}]   ;;  %s663_s1 = inlined_call_operand.vmem [shape: f32[64,128], index: 1, kind: input, shape index: {}]   ;;  %s664_s2 = inlined_call_operand.vmem [shape: f32[1,128], index: 2, kind: input, shape index: {}]   ;;  %s665_s3 = inlined_call_operand.vmem [shape: f32[128,128], index: 3, kind: input, shape index: {}]   ;;  %s666_s4 = inlined_call_operand.vmem [shape: f32[1,128], index: 4, kind: input, shape index: {}]   ;;  %s667_s5 = inlined_call_operand.hbm [shape: f32[16,128], index: 5, kind: output, shape index: {}]  }
   0x1   :  { %v22_v0 = vld [vmem:[%s662_s0 + $0x8] sm:$0xff]  ;;  %v21_v1 = vld [vmem:[%s662_s0] sm:$0xff]  ;;  %484 = vset.pattern.permute.xlu1 %v510_v3  ;;  %482 = vset.pattern.permute.xlu0 %v510_v3  ;;  %v115_v7 = vld [vmem:[%s663_s1 + $0x10] sm:$0xff] }
   0x2   :  { %v113_v2 = vld [vmem:[%s663_s1] sm:$0xff]  ;;  %v35_v4 = vsub.s32 0, %v22_v0  ;;  %v24_v5 = vsub.s32 0, %v21_v1  ;;  %v114_v6 = vld [vmem:[%s663_s1 + $0x8] sm:$0xff]  ;;  %v116_v9 = vld [vmem:[%s663_s1 + $0x18] sm:$0xff] }
   0x3   :  { %v420_v8 = vpack.c.bf16 %v114_v6, %v113_v2 }
   0x4   :  { %10 = vsyncpa [#allocation3], 0  ;;  %v329_v10 = vmin.u32 %v35_v4, %v22_v0  ;;  %v328_v11 = vmin.u32 %v24_v5, %v21_v1  ;;  %v424_v12 = vpack.c.bf16 %v116_v9, %v115_v7  ;;  %vm34_vm0 = vcmp.lt.s32.totalorder %v22_v0, 0  ;;  %v117_v45 = vld [vmem:[%s663_s1 + $0x20] sm:$0xff]  ;;  %v118_v46 = vld [vmem:[%s663_s1 + $0x28] sm:$0xff] }
   0x5   :  { %421 = vmatprep.subr.bf16.mxu0 %v420_v8  ;;  %vm23_vm1 = vcmp.lt.s32.totalorder %v21_v1, 0  ;;  %v428_v50 = vpack.c.bf16 %v118_v46, %v117_v45  ;;  %v119_v54 = vld [vmem:[%s663_s1 + $0x30] sm:$0xff]  ;;  %v120_v55 = vld [vmem:[%s663_s1 + $0x38] sm:$0xff]  ;;  %v511_v56 = vmov 1   ;;  %v212_v58 = vld [vmem:[%s665_s3] sm:$0xff] }
   0x6   :  { %v564_v13 = vmul.u32.u64.low 3435973837, %v329_v10  ;;  %v565_v14 = vmul.u32.u64.high 3435973837, %v329_v10, %v564_v13  ;;  %v567_v15 = vmul.u32.u64.low 3435973837, %v328_v11  ;;  %v568_v16 = vmul.u32.u64.high 3435973837, %v328_v11, %v567_v15  ;;  %423 = vmatpush3.bf16.msra.mxu0 %v420_v8  ;;  %v213_v59 = vld [vmem:[%s665_s3 + $0x8] sm:$0xff]  ;;  %v214_v60 = vld [vmem:[%s665_s3 + $0x10] sm:$0xff] }
   0x7   :  { %v570_v17 = vmul.u32.u64.low 2748779070, %v329_v10  ;;  %v571_v18 = vmul.u32.u64.high 2748779070, %v329_v10, %v570_v17  ;;  %v573_v19 = vmul.u32.u64.low 2748779070, %v328_v11  ;;  %v574_v20 = vmul.u32.u64.high 2748779070, %v328_v11, %v573_v19  ;;  %425 = vmatprep.subr.bf16.mxu0 %v424_v12  ;;  %v215_v62 = vld [vmem:[%s665_s3 + $0x18] sm:$0xff]  ;;  %v216_v0 = vld [vmem:[%s665_s3 + $0x20] sm:$0xff] }
   0x8   :  { %v40_v21 = vshrl.u32 %v565_v14, 2  ;;  %v29_v22 = vshrl.u32 %v568_v16, 2  ;;  %v432_v57 = vpack.c.bf16 %v120_v55, %v119_v54  ;;  %v436_v61 = vpack.c.bf16 %v213_v59, %v212_v58  ;;  %v217_v1 = vld [vmem:[%s665_s3 + $0x28] sm:$0xff]  ;;  %v218_v3 = vld [vmem:[%s665_s3 + $0x30] sm:$0xff]  ;;  %v219_v4 = vld [vmem:[%s665_s3 + $0x38] sm:$0xff] }
   0x9   :  { %v72_v23 = vshrl.u32 %v571_v18, 5  ;;  %v61_v24 = vshrl.u32 %v574_v20, 5  ;;  %v440_v63 = vpack.c.bf16 %v215_v62, %v214_v60  ;;  %v444_v2 = vpack.c.bf16 %v217_v1, %v216_v0  ;;  %v220_v6 = vld [vmem:[%s665_s3 + $0x40] sm:$0xff]  ;;  %v221_v7 = vld [vmem:[%s665_s3 + $0x48] sm:$0xff]  ;;  %v222_v9 = vld [vmem:[%s665_s3 + $0x50] sm:$0xff] }
   0xa   :  { %427 = vmatpush3.bf16.msra.mxu0 %v424_v12  ;;  %v41_v25 = vmul.u32 5, %v40_v21  ;;  %v30_v26 = vmul.u32 5, %v29_v22  ;;  %437 = vmatprep.subr.bf16.mxu1 %v436_v61  ;;  %v448_v5 = vpack.c.bf16 %v219_v4, %v218_v3  ;;  %v452_v8 = vpack.c.bf16 %v221_v7, %v220_v6  ;;  %v224_v12 = vld [vmem:[%s665_s3 + $0x60] sm:$0xff]  ;;  %v225_v13 = vld [vmem:[%s665_s3 + $0x68] sm:$0xff] }
   0xb   :  { %v73_v27 = vmul.u32 50, %v72_v23  ;;  %v62_v28 = vmul.u32 50, %v61_v24  ;;  %429 = vmatprep.subr.bf16.mxu0 %v428_v50  ;;  %439 = vmatpush3.bf16.msra.mxu1 %v436_v61  ;;  %v460_v14 = vpack.c.bf16 %v225_v13, %v224_v12  ;;  %v89_v15 = vlaneseq  ;;  %v226_v24 = vld [vmem:[%s665_s3 + $0x70] sm:$0xff] }
   0xc   :  { %v42_v29 = vsub.s32 %v329_v10, %v41_v25  ;;  %v31_v30 = vsub.s32 %v328_v11, %v30_v26  ;;  %441 = vmatprep.subr.bf16.mxu1 %v440_v63  ;;  %v512_v21 = vmov 0.0   ;;  %v227_v25 = vld [vmem:[%s665_s3 + $0x78] sm:$0xff] }
   0xd   :  { %v74_v31 = vsub.s32 %v329_v10, %v73_v27  ;;  %v63_v32 = vsub.s32 %v328_v11, %v62_v28  ;;  %v223_v10 = vld [vmem:[%s665_s3 + $0x58] sm:$0xff]  ;;  %v90_v18 = vand.u32 127, %v89_v15  ;;  %v464_v26 = vpack.c.bf16 %v227_v25, %v226_v24  ;;  %v334_v27 = vld [vmem:[%s664_s2] ss:$0 sm:$0xff]  ;;  %s513_s3 = smov [#allocation2]  }
   0xe   :  { %v43_v33 = vsub.s32 0, %v42_v29  ;;  %v32_v34 = vsub.s32 0, %v31_v30  ;;  %431 = vmatpush3.bf16.msra.mxu0 %v428_v50  ;;  %v456_v11 = vpack.c.bf16 %v223_v10, %v222_v9  ;;  %s317_s20 = sshll.u32 %s513_s3, 4  ;;  %s318_s20 = int_to_ptr.vmem [resolvable:$true] %s317_s20 }
   0xf   :  { %v75_v35 = vsub.s32 0, %v74_v31  ;;  %v64_v36 = vsub.s32 0, %v63_v32  ;;  %433 = vmatprep.subr.bf16.mxu0 %v432_v57  ;;  %443 = vmatpush3.bf16.msra.mxu1 %v440_v63  ;;  %s486_s2 = scalar_lea.vmem %s318_s20, 256  ;;  %p491_p1 = scmp.lt.s32.totalorder %s318_s20, %s318_s20 }
  0x10   :  { %v44_v37 = vsel %vm34_vm0, %v43_v33, %v42_v29  ;;  %v33_v38 = vsel %vm23_vm1, %v32_v34, %v31_v30  ;;  %445 = vmatprep.subr.bf16.mxu1 %v444_v2  ;;  %v337_v34 = vld [vmem:[%s666_s4] ss:$0 sm:$0xff]  ;;  %p487_p0 = scmp.ne.s32.totalorder %s318_s20, %s486_s2  ;;  %p492_p2 = scmp.lt.s32.totalorder %s486_s2, %s486_s2 }
  0x11   :  { %vm46_vm2 = vcmp.ne.s32.totalorder %v44_v37, 0  ;;  %vm48_vm3 = vcmp.lt.s32.totalorder %v44_v37, 0  ;;  %v52_v39 = vadd.s32 5, %v44_v37  ;;  %vm45_vm4 = vcmp.ne.s32.totalorder %v33_v38, 0 }
  0x12   :  { %vm50_vm5 = vmand %vm48_vm3, %vm46_vm2  ;;  %vm47_vm6 = vcmp.lt.s32.totalorder %v33_v38, 0  ;;  %v51_v40 = vadd.s32 5, %v33_v38  ;;  %v76_v41 = vsel %vm34_vm0, %v75_v35, %v74_v31  ;;  %v65_v42 = vsel %vm23_vm1, %v64_v36, %v63_v32  ;;  %435 = vmatpush3.bf16.msra.mxu0 %v432_v57  ;;  %p493_p3 = por %p492_p2, %p491_p1 }
  0x13   :  { %v54_v43 = vsel %vm50_vm5, %v52_v39, %v44_v37  ;;  %vm49_vm7 = vmand %vm47_vm6, %vm45_vm4  ;;  %vm78_vm8 = vcmp.ne.s32.totalorder %v76_v41, 0  ;;  %vm80_vm9 = vcmp.lt.s32.totalorder %v76_v41, 0  ;;  %v84_v44 = vadd.s32 50, %v76_v41  ;;  %447 = vmatpush3.bf16.msra.mxu1 %v444_v2 }
  0x14   :  { %95 = vperm.xlu1 %484, %v54_v43   ;;  %v53_v47 = vsel %vm49_vm7, %v51_v40, %v33_v38  ;;  %vm82_vm10 = vmand %vm80_vm9, %vm78_vm8  ;;  %vm77_vm11 = vcmp.ne.s32.totalorder %v65_v42, 0  ;;  %vm79_vm12 = vcmp.lt.s32.totalorder %v65_v42, 0  ;;  %v83_v48 = vadd.s32 50, %v65_v42  ;;  %449 = vmatprep.subr.bf16.mxu1 %v448_v5  ;;  %p494_p4 = pnand %p493_p3, %p487_p0 }
  0x15   :  { %92 = vperm.xlu0 %482, %v53_v47   ;;  %v86_v49 = vsel %vm82_vm10, %v84_v44, %v76_v41  ;;  %vm81_vm13 = vmand %vm79_vm12, %vm77_vm11  ;;  %vm128_vm3 = vcmask 523264  }
  0x16   :  { %v88_v51 = vadd.s32 5, %v86_v49  ;;  %v85_v52 = vsel %vm81_vm13, %v83_v48, %v65_v42 }
  0x17   :  { %v87_v53 = vadd.s32 5, %v85_v52  ;;  %451 = vmatpush3.bf16.msra.mxu1 %v448_v5 }
  0x18   :  { %485 = vset.pattern.permute.xlu1 %v511_v56  ;;  %453 = vmatprep.subr.bf16.mxu1 %v452_v8 }
  0x19   :  { %483 = vset.pattern.permute.xlu0 %v511_v56  ;;  %103 = vperm.xlu1 %485, %v88_v51  }
  0x1a   :  { %100 = vperm.xlu0 %483, %v87_v53  }
  0x1b   :  { %455 = vmatpush3.bf16.msra.mxu1 %v452_v8 }
  0x1c   :  { %457 = vmatprep.subr.bf16.mxu1 %v456_v11 }
  0x1f   :  { %459 = vmatpush3.bf16.msra.mxu1 %v456_v11 }
  0x20   :  { %461 = vmatprep.subr.bf16.mxu1 %v460_v14 }
  0x23   :  { %463 = vmatpush3.bf16.msra.mxu1 %v460_v14 }
  0x24   :  { %465 = vmatprep.subr.bf16.mxu1 %v464_v26 }
  0x27   :  { %467 = vmatpush3.bf16.msra.mxu1 %v464_v26 }
  0x93   :  { %v96_v16 = vpop.permute.xlu1 %95 }
  0x94   :  { %v93_v17 = vpop.permute.xlu0 %92  ;;  %vm98_vm14 = vcmp.eq.s32.totalorder %v90_v18, %v96_v16 }
  0x95   :  { %vm97_vm0 = vcmp.eq.s32.totalorder %v90_v18, %v93_v17 }
  0x98   :  { %v104_v19 = vpop.permute.xlu1 %103 }
  0x99   :  { %vm106_vm15 = vcmp.eq.s32.totalorder %v90_v18, %v104_v19  ;;  %v101_v20 = vpop.permute.xlu0 %100 }
  0x9a   :  { %vm108_vm1 = vmor %vm98_vm14, %vm106_vm15  ;;  %vm105_vm2 = vcmp.eq.s32.totalorder %v90_v18, %v101_v20 }
  0x9b   :  { %vm107_vm4 = vmor %vm97_vm0, %vm105_vm2  ;;  %v333_v22 = vsel %vm108_vm1, 1.0, %v512_v21 }
  0x9c   :  { %v332_v23 = vsel %vm107_vm4, 1.0, %v512_v21 }
  0x9d   :  { %382 = vmatprep.mubr.msk.f32.mxu0 %vm128_vm3, %v332_v23 }
  0x9e   :  { %383 = vmatmul.mubr.msk.f32.vlgmr.msra.gmra.mrb[0].mxu0 %vm128_vm3, %v333_v22 }
 0x171   :  { %v384_v28 = vpop.f32.mrb[0].mxu0 }
 0x172   :  { %v207_v29 = vadd.f32 %v384_v28, %v334_v27  ;;  %v201_v30 = vpop.f32.mrb[1].mxu0 }
 0x173   :  { %v202_v31 = vadd.f32 %v334_v27, %v201_v30 }
 0x174   :  { %v211_v33 = vmax.f32 %v207_v29, 0.0 }
 0x175   :  { %v210_v32 = vmax.f32 %v202_v31, 0.0 }
 0x177   :  { %417 = vmatprep.mubr.f32.mxu1 %v210_v32 }
 0x178   :  { %418 = vmatmul.mubr.f32.vlgmr.msra.gmra.mrb[0].mxu1 %v211_v33 }
 0x24b   :  { %v419_v35 = vpop.f32.mrb[0].mxu1 }
 0x24c   :  { %v307_v36 = vadd.f32 %v419_v35, %v337_v34  ;;  %v301_v37 = vpop.f32.mrb[1].mxu1 }
 0x24d   :  { %v302_v38 = vadd.f32 %v337_v34, %v301_v37 }
 0x24e   :  { %311 = vst [vmem:[#allocation2 + $0x8] sm:$0xff] %v307_v36 }
 0x24f   :  { %310 = vst [vmem:[#allocation2] sm:$0xff] %v302_v38 }
 0x250   :  { %497 = shalt.err (!%p494_p4)
}
 0x251   :  { %s498_s4 = scalar_lea.hbm %s667_s5, 256 }
 0x252   :  { %p499_p5 = scmp.ne.s32.totalorder %s667_s5, %s498_s4  ;;  %p502_p6 = scmp.lt.u32.totalorder %s498_s4, %s667_s5 }
 0x254   :  { %p504_p7 = pnand %p502_p6, %p499_p5 }
 0x256   :  { %507 = shalt.err (!%p504_p7)
}
 0x257   :  { %s514_s27 = smov 128   ;;  %s515_s28 = smov 8  }
 0x258   :  { %323 = dma.vmem_to_hbm [thread:$0]  %s318_s20, 256, %s667_s5, [#allocation3], %s514_s27, %s514_s27, %s515_s28  }
 0x259   :  { %508 = dma.done.wait [#allocation3], 256  }
 0x25a   :  { %509 = vsyncadd [#allocation3], 4294967040 }
 0x25b   :  { %327 = vsyncpa [#allocation3], 1 }

</bundles_post_ra>
